<compile_context>
chip_gen: v5e
topology: v5e:2x2
jax: 0.10.0
libtpu: 0.0.40
codegen_flags: <defaults>
</compile_context>

<pallas_src>
import jax
import jax.numpy as jnp
import numpy as np
from jax.experimental import pallas as pl
from jax.experimental.pallas import tpu as pltpu

EPS = 1e-5  # torch.nn.LayerNorm default eps


def _round_up(x, m):
    return ((x + m - 1) // m) * m


def _layernorm(x, gamma, beta):
    # torch LayerNorm semantics: biased variance over last dim, eps inside sqrt.
    mu = jnp.mean(x, axis=-1, keepdims=True)
    var = jnp.mean((x - mu) ** 2, axis=-1, keepdims=True)
    return (x - mu) * jax.lax.rsqrt(var + EPS) * gamma + beta


def _vmem_capacity_bytes():
    """Generation-aware VMEM capacity; conservative 64 MiB (v7x per-TC) fallback."""
    try:
        cap = getattr(pltpu.get_tpu_info(), "vmem_capacity_bytes", None)
        return int(cap) if cap else 64 * 1024 * 1024
    except Exception:
        return 64 * 1024 * 1024


# --------------------------------------------------------------------------------------
# Kernel A (one-shot, no grid): batch-invariant numerical-column precompute.
#   num_proj  = maskedMean(LN_h(column-name token embeddings)) @ W_pad   (n_num, Hp)
#   bias_proj = num_bias @ W_pad                                         (1, Hp)
# --------------------------------------------------------------------------------------
def _num_column_precompute_kernel(col_tok_ref,    # (n_num, S, D)
                                  mask_ref,       # (n_num, S)
                                  gamma_ref,      # (1, D)
                                  beta_ref,       # (1, D)
                                  num_bias_ref,   # (1, D)
                                  w_ref,          # (D, Hp)
                                  num_proj_ref,   # out (n_num, Hp)
                                  bias_proj_ref): # out (1, Hp)
    h = _layernorm(col_tok_ref[...], gamma_ref[...], beta_ref[...])      # (n_num, S, D)
    m = mask_ref[...]                                                    # (n_num, S)
    h = h * m[:, :, None]
    cnt = jnp.maximum(jnp.sum(m, axis=1, keepdims=True), 1.0)            # guard all-pad rows
    col = jnp.sum(h, axis=1) / cnt                                       # (n_num, D)
    w = w_ref[...]
    num_proj_ref[...] = jnp.dot(col, w, preferred_element_type=jnp.float32)
    bias_proj_ref[...] = jnp.dot(num_bias_ref[...], w, preferred_element_type=jnp.float32)


# --------------------------------------------------------------------------------------
# Kernel B (grid over vocab tiles): LayerNorm + align-projection of the value table.
#   val_proj = LN_v(word_emb_value) @ W_pad    (vocab_pad, Hp)   -- batch-invariant.
# --------------------------------------------------------------------------------------
def _value_table_project_kernel(tbl_ref,    # (Vt, D)
                                gamma_ref,  # (1, D)
                                beta_ref,   # (1, D)
                                w_ref,      # (D, Hp)
                                out_ref):   # (Vt, Hp)
    v = _layernorm(tbl_ref[...], gamma_ref[...], beta_ref[...])
    out_ref[...] = jnp.dot(v, w_ref[...], preferred_element_type=jnp.float32)


# --------------------------------------------------------------------------------------
# Kernel C (grid over batch tiles of Bt rows, "parallel"):
#   num_out[b] = x_num[b] * num_proj + bias_proj                       (VPU)
#   cat_out[b,c] = (sum_s mask * onehot(id)) @ val_proj / sum_s mask   (one MXU matmul)
# --------------------------------------------------------------------------------------
def _make_batched_kernel(Bt, n_cat, S, Vp, compute_dtype):
    R = Bt * n_cat

    def kernel(x_num_ref,      # (Bt, n_num)
               ids_ref,        # (Bt*n_cat, S) int32
               mask_ref,       # (Bt*n_cat, S) f32
               num_proj_ref,   # (n_num, Hp)   resident
               bias_proj_ref,  # (1, Hp)       resident
               val_proj_ref,   # (Vp, Hp)      resident
               num_out_ref,    # out (Bt, n_num, Hp)
               cat_out_ref):   # out (Bt*n_cat, Hp)
        # ---- numerical features (pure VPU multiply-add) ----
        xb = x_num_ref[...]                                              # (Bt, n_num)
        num_out_ref[...] = (xb[:, :, None] * num_proj_ref[...][None, :, :]
                            + bias_proj_ref[...][None, :, :])            # (Bt, n_num, Hp)

        # ---- categorical features: masked one-hot pooling + one matmul ----
        ids = ids_ref[...]                                               # (R, S) int32
        msk = mask_ref[...]                                              # (R, S) f32
        iota_v = jax.lax.broadcasted_iota(jnp.int32, (R, S, Vp), 2)
        pooled = jnp.sum((ids[:, :, None] == iota_v).astype(jnp.float32)
                         * msk[:, :, None], axis=1)                      # (R, Vp)
        cnt = jnp.maximum(jnp.sum(msk, axis=1, keepdims=True), 1.0)      # guard all-pad rows
        cat = jnp.dot(pooled.astype(compute_dtype),
                      val_proj_ref[...].astype(compute_dtype),
                      preferred_element_type=jnp.float32)                # (R, Hp)
        cat_out_ref[...] = cat * pl.reciprocal(cnt)                      # exact reciprocal

    return kernel


def _pick_batch_tile(B, n_num, n_cat, S, Hp, Vp, vmem_cap, max_batch_tile=None):
    """Largest batch tile within ~1/4 of VMEM, accounting for the resident projected
    table / weight blocks; multiple of 8 (sublane rule); prefers a divisor of B."""
    budget = max(vmem_cap // 4, 2 << 20)
    resident = 4 * 2 * (n_num * Hp + Hp + Vp * Hp)                 # num/bias/val_proj blocks
    per_row = 4 * 2 * (n_num + 2 * n_cat * S                       # x_num + ids + mask
                       + n_num * Hp + n_cat * Hp)                  # both output blocks
    bt = (budget - resident) // max(per_row, 1)
    bt = int(max(8, min(bt, 1024)))
    bt = max(8, (bt // 8) * 8)
    if max_batch_tile is not None:
        bt = max(8, min(bt, max(8, (max_batch_tile // 8) * 8)))
    bt = min(bt, _round_up(B, 8))
    # Prefer a tile that divides B exactly (no all-padding grid step; keeps the grid
    # length balanced across v7x's two TensorCores when possible).
    for cand in range(bt, 7, -8):
        if B % cand == 0:
            return cand
    return bt


def cm2_input_encoder(params, tokenized, *, compute_dtype=jnp.float32, max_batch_tile=None):
    """Forward pass of CM2InputEncoder; feature_processor math runs in Pallas kernels.

    compute_dtype: operand dtype for the batched align matmul (accumulation stays f32).
    At realistic CM2 dims use jnp.bfloat16 for the v6e/v7x MXU; f32 default keeps the
    self-check tight."""
    x_num = tokenized["x_num"].astype(jnp.float32)               # (B, n_num)
    num_ids = tokenized["num_col_input_ids"]                     # (n_num, S) int32
    num_mask = tokenized["num_att_mask"].astype(jnp.float32)     # (n_num, S)
    cat_ids = tokenized["x_cat_input_ids"].astype(jnp.int32)     # (B, n_cat, S)
    cat_mask = tokenized["cat_att_mask"].astype(jnp.float32)     # (B, n_cat, S)

    B, n_num = x_num.shape
    _, n_cat, S = cat_ids.shape
    vocab, D = params["word_emb_value"].shape
    H = params["w_align"].shape[1]
    F = n_num + n_cat

    # Lane-dense outputs: pad the align projection's output dim to a multiple of 128 so
    # every output store is an unmasked full-lane vst; padding is sliced off below.
    Hp = _round_up(H, 128)
    w_pad = jnp.pad(params["w_align"].astype(jnp.float32), ((0, 0), (0, Hp - H)))

    g_h = params["ln_h_gamma"].reshape(1, D)
    b_h = params["ln_h_beta"].reshape(1, D)
    g_v = params["ln_v_gamma"].reshape(1, D)
    b_v = params["ln_v_beta"].reshape(1, D)

    vmem_cap = _vmem_capacity_bytes()

    # ---- Kernel A: one-shot batch-invariant numerical-column precompute ----
    num_col_tok_emb = jnp.take(params["word_emb_header"].astype(jnp.float32),
                               num_ids, axis=0)                            # (n_num, S, D)
    num_proj, bias_proj = pl.pallas_call(
        _num_column_precompute_kernel,
        out_shape=(jax.ShapeDtypeStruct((n_num, Hp), jnp.float32),
                   jax.ShapeDtypeStruct((1, Hp), jnp.float32)),
    )(num_col_tok_emb, num_mask, g_h, b_h,
      params["num_bias"].astype(jnp.float32), w_pad)

    # ---- Kernel B: LayerNorm + align-projection of the whole value table (once) ----
    Vt = min(512, _round_up(vocab, 8))
    Vp = _round_up(vocab, Vt)
    val_tbl = jnp.pad(params["word_emb_value"].astype(jnp.float32),
                      ((0, Vp - vocab), (0, 0)))
    val_proj = pl.pallas_call(
        _value_table_project_kernel,
        out_shape=jax.ShapeDtypeStruct((Vp, Hp), jnp.float32),
        grid=(Vp // Vt,),
        in_specs=[pl.BlockSpec((Vt, D), lambda v: (v, 0)),
                  pl.BlockSpec((1, D), lambda v: (0, 0)),
                  pl.BlockSpec((1, D), lambda v: (0, 0)),
                  pl.BlockSpec((D, Hp), lambda v: (0, 0))],
        out_specs=pl.BlockSpec((Vt, Hp), lambda v: (v, 0)),
        compiler_params=pltpu.CompilerParams(dimension_semantics=("parallel",)),
    )(val_tbl, g_v, b_v, w_pad)

    # ---- Kernel C: batched kernel, Bt batch rows per grid step ----
    Bt = _pick_batch_tile(B, n_num, n_cat, S, Hp, Vp, vmem_cap, max_batch_tile)
    B_pad = _round_up(B, Bt)
    pad = B_pad - B
    x_num_p = jnp.pad(x_num, ((0, pad), (0, 0)))
    # Pre-flatten (batch, cat) in the wrapper so the kernel never reshapes its inputs.
    cat_ids_p = jnp.pad(cat_ids, ((0, pad), (0, 0), (0, 0))).reshape(B_pad * n_cat, S)
    cat_mask_p = jnp.pad(cat_mask, ((0, pad), (0, 0), (0, 0))).reshape(B_pad * n_cat, S)

    kernel = _make_batched_kernel(Bt, n_cat, S, Vp, compute_dtype)
    num_out_p, cat_out_p = pl.pallas_call(
        kernel,
        out_shape=(jax.ShapeDtypeStruct((B_pad, n_num, Hp), jnp.float32),
                   jax.ShapeDtypeStruct((B_pad * n_cat, Hp), jnp.float32)),
        grid=(B_pad // Bt,),
        in_specs=[
            pl.BlockSpec((Bt, n_num), lambda b: (b, 0)),
            pl.BlockSpec((Bt * n_cat, S), lambda b: (b, 0)),
            pl.BlockSpec((Bt * n_cat, S), lambda b: (b, 0)),
            pl.BlockSpec((n_num, Hp), lambda b: (0, 0)),   # resident across steps
            pl.BlockSpec((1, Hp), lambda b: (0, 0)),       # resident across steps
            pl.BlockSpec((Vp, Hp), lambda b: (0, 0)),      # resident across steps
        ],
        out_specs=(
            pl.BlockSpec((Bt, n_num, Hp), lambda b: (b, 0, 0)),
            pl.BlockSpec((Bt * n_cat, Hp), lambda b: (b, 0)),
        ),
        compiler_params=pltpu.CompilerParams(
            dimension_semantics=("parallel",),             # steps independent -> megacore
            vmem_limit_bytes=int(min(vmem_cap * 3 // 4, 100 * 1024 * 1024)),
        ),
    )(x_num_p, cat_ids_p, cat_mask_p, num_proj, bias_proj, val_proj)

    num_out = num_out_p[:B, :, :H]
    cat_out = cat_out_p.reshape(B_pad, n_cat, Hp)[:B, :, :H]
    embedding = jnp.concatenate([num_out, cat_out], axis=1)
    attention_mask = jnp.ones((B, F), dtype=jnp.float32)
    return {"embedding": embedding, "attention_mask": attention_mask}


# --------------------------------------------------------------------------------------
# Pure-JAX reference (mirrors the PyTorch feature_processor math).
# --------------------------------------------------------------------------------------
def cm2_input_encoder_reference(params, tokenized):
    x_num = tokenized["x_num"].astype(jnp.float32)
    num_ids = tokenized["num_col_input_ids"]
    num_mask = tokenized["num_att_mask"]
    cat_ids = tokenized["x_cat_input_ids"]
    cat_mask = tokenized["cat_att_mask"]

    g_h = params["ln_h_gamma"][0]   # (1, D)
    b_h = params["ln_h_beta"][0]
    g_v = params["ln_v_gamma"][0]
    b_v = params["ln_v_beta"][0]

    h = jnp.take(params["word_emb_header"], num_ids, axis=0)        # (n_num, S, D)
    h = _layernorm(h, g_h[None], b_h[None])
    h = h * num_mask[:, :, None]
    col_emb = h.sum(axis=1) / num_mask.sum(axis=1, keepdims=True)   # (n_num, D)
    num_feat = col_emb[None] * x_num[:, :, None] + params["num_bias"][None]
    num_out = num_feat @ params["w_align"]                           # (B, n_num, H)

    c = jnp.take(params["word_emb_value"], cat_ids, axis=0)          # (B, n_cat, S, D)
    c = _layernorm(c, g_v[None, None], b_v[None, None])
    c = c * cat_mask[..., None]
    cat_emb = c.sum(axis=2) / cat_mask.sum(axis=2, keepdims=True)    # (B, n_cat, D)
    cat_out = cat_emb @ params["w_align"]                            # (B, n_cat, H)

    emb = jnp.concatenate([num_out, cat_out], axis=1)
    mask = jnp.ones(emb.shape[:2], dtype=jnp.float32)
    return {"embedding": emb, "attention_mask": mask}


def make_params(key, vocab_size, vocab_dim, hidden_dim):
    ks = jax.random.split(key, 9)
    bound = 1.0 / np.sqrt(vocab_dim)
    return {
        "word_emb_header": 0.02 * jax.random.normal(ks[0], (vocab_size, vocab_dim), jnp.float32),
        "word_emb_value": 0.02 * jax.random.normal(ks[1], (vocab_size, vocab_dim), jnp.float32),
        "ln_h_gamma": (1.0 + 0.05 * jax.random.normal(ks[2], (1, 1, vocab_dim), jnp.float32)),
        "ln_h_beta": 0.05 * jax.random.normal(ks[3], (1, 1, vocab_dim), jnp.float32),
        "ln_v_gamma": (1.0 + 0.05 * jax.random.normal(ks[4], (1, 1, vocab_dim), jnp.float32)),
        "ln_v_beta": 0.05 * jax.random.normal(ks[5], (1, 1, vocab_dim), jnp.float32),
        "num_bias": jax.random.uniform(ks[6], (1, vocab_dim), jnp.float32, -bound, bound),
        "w_align": jax.random.uniform(ks[7], (vocab_dim, hidden_dim), jnp.float32, -bound, bound),
    }


def make_tokenized(key, batch, n_num, n_cat, seq_len, vocab_size):
    """Deterministic stand-in for CM2FeatureExtractor's tokenizer output."""
    ks = jax.random.split(key, 6)
    pos = jnp.arange(seq_len)

    num_len = jax.random.randint(ks[0], (n_num,), 1, seq_len + 1)
    num_mask = (pos[None, :] < num_len[:, None]).astype(jnp.float32)
    num_ids = jax.random.randint(ks[1], (n_num, seq_len), 1, vocab_size)
    num_ids = (num_ids * num_mask.astype(jnp.int32)).astype(jnp.int32)   # pad id = 0

    cat_len = jax.random.randint(ks[2], (batch, n_cat), 1, seq_len + 1)
    cat_mask = (pos[None, None, :] < cat_len[:, :, None]).astype(jnp.float32)
    cat_ids = jax.random.randint(ks[3], (batch, n_cat, seq_len), 1, vocab_size)
    cat_ids = (cat_ids * cat_mask.astype(jnp.int32)).astype(jnp.int32)

    x_num = jax.random.normal(ks[4], (batch, n_num), jnp.float32)

    return {
        "x_num": x_num,
        "num_col_input_ids": num_ids,
        "num_att_mask": num_mask,
        "x_cat_input_ids": cat_ids,
        "cat_att_mask": cat_mask,
    }


if __name__ == "__main__":
    B, N_NUM, N_CAT, S = 12, 3, 2, 8      # B > batch tile (8) so the grid has >1 step
    VOCAB, D, H = 100, 32, 32

    root = jax.random.PRNGKey(0)
    k_params, k_tok = jax.random.split(root)
    params = make_params(k_params, VOCAB, D, H)
    tokenized = make_tokenized(k_tok, B, N_NUM, N_CAT, S, VOCAB)

    out = cm2_input_encoder(params, tokenized, max_batch_tile=8)
    jax.block_until_ready(out["embedding"])

    # Reference with exact-f32 matmuls; tolerance covers the algebraic reassociation in
    # the kernels plus MXU f32 multi-pass differences across TPU generations.
    with jax.default_matmul_precision("float32"):
        ref = cm2_input_encoder_reference(params, tokenized)
    np.testing.assert_allclose(np.asarray(out["embedding"]),
                               np.asarray(ref["embedding"]), rtol=5e-3, atol=5e-3)
    np.testing.assert_allclose(np.asarray(out["attention_mask"]),
                               np.asarray(ref["attention_mask"]))
    assert out["embedding"].shape == (B, N_NUM + N_CAT, H)

    print("KERNEL_OK")
</pallas_src>

<mosaic_0001>
module attributes {stable_mosaic.version = 11 : i64} {
  func.func @_num_column_precompute_kernel(%arg0: memref<3x8x32xf32, #tpu.memory_space<vmem>>, %arg1: memref<3x8xf32, #tpu.memory_space<vmem>>, %arg2: memref<1x32xf32, #tpu.memory_space<vmem>>, %arg3: memref<1x32xf32, #tpu.memory_space<vmem>>, %arg4: memref<1x32xf32, #tpu.memory_space<vmem>>, %arg5: memref<32x128xf32, #tpu.memory_space<vmem>>, %arg6: memref<3x128xf32, #tpu.memory_space<vmem>>, %arg7: memref<1x128xf32, #tpu.memory_space<vmem>>) attributes {dimension_semantics = [], scalar_prefetch = 0 : i64, scratch_operands = 0 : i64, tpu.core_type = #tpu.core_type<tc>} {
    %c0 = arith.constant 0 : index
    %c0_0 = arith.constant 0 : index
    %c0_1 = arith.constant 0 : index
    %0 = vector.load %arg0[%c0, %c0_0, %c0_1] : memref<3x8x32xf32, #tpu.memory_space<vmem>>, vector<3x8x32xf32>
    %c0_2 = arith.constant 0 : index
    %c0_3 = arith.constant 0 : index
    %1 = vector.load %arg2[%c0_2, %c0_3] : memref<1x32xf32, #tpu.memory_space<vmem>>, vector<1x32xf32>
    %c0_4 = arith.constant 0 : index
    %c0_5 = arith.constant 0 : index
    %2 = vector.load %arg3[%c0_4, %c0_5] : memref<1x32xf32, #tpu.memory_space<vmem>>, vector<1x32xf32>
    %cst = arith.constant dense<0.000000e+00> : vector<3x8xf32>
    %3 = vector.multi_reduction <add>, %0, %cst [2] : vector<3x8x32xf32> to vector<3x8xf32>
    %4 = vector.shape_cast %3 : vector<3x8xf32> to vector<3x8x1xf32>
    %cst_6 = arith.constant 3.200000e+01 : f32
    %5 = vector.broadcast %cst_6 : f32 to vector<3x8x1xf32>
    %6 = arith.divf %4, %5 : vector<3x8x1xf32>
    %7 = vector.broadcast %6 : vector<3x8x1xf32> to vector<3x8x32xf32>
    %8 = arith.subf %0, %7 : vector<3x8x32xf32>
    %9 = arith.mulf %8, %8 : vector<3x8x32xf32>
    %cst_7 = arith.constant dense<0.000000e+00> : vector<3x8xf32>
    %10 = vector.multi_reduction <add>, %9, %cst_7 [2] : vector<3x8x32xf32> to vector<3x8xf32>
    %11 = vector.shape_cast %10 : vector<3x8xf32> to vector<3x8x1xf32>
    %cst_8 = arith.constant 3.200000e+01 : f32
    %12 = vector.broadcast %cst_8 : f32 to vector<3x8x1xf32>
    %13 = arith.divf %11, %12 : vector<3x8x1xf32>
    %14 = vector.broadcast %6 : vector<3x8x1xf32> to vector<3x8x32xf32>
    %15 = arith.subf %0, %14 : vector<3x8x32xf32>
    %cst_9 = arith.constant 9.99999974E-6 : f32
    %16 = vector.broadcast %cst_9 : f32 to vector<3x8x1xf32>
    %17 = arith.addf %13, %16 : vector<3x8x1xf32>
    %18 = math.rsqrt %17 : vector<3x8x1xf32>
    %19 = vector.broadcast %18 : vector<3x8x1xf32> to vector<3x8x32xf32>
    %20 = arith.mulf %15, %19 : vector<3x8x32xf32>
    %21 = vector.shape_cast %1 : vector<1x32xf32> to vector<1x1x32xf32>
    %22 = vector.broadcast %21 : vector<1x1x32xf32> to vector<3x8x32xf32>
    %23 = arith.mulf %20, %22 : vector<3x8x32xf32>
    %24 = vector.shape_cast %2 : vector<1x32xf32> to vector<1x1x32xf32>
    %25 = vector.broadcast %24 : vector<1x1x32xf32> to vector<3x8x32xf32>
    %26 = arith.addf %23, %25 : vector<3x8x32xf32>
    %c0_10 = arith.constant 0 : index
    %c0_11 = arith.constant 0 : index
    %27 = vector.load %arg1[%c0_10, %c0_11] : memref<3x8xf32, #tpu.memory_space<vmem>>, vector<3x8xf32>
    %28 = vector.shape_cast %27 : vector<3x8xf32> to vector<3x8x1xf32>
    %29 = vector.broadcast %28 : vector<3x8x1xf32> to vector<3x8x32xf32>
    %30 = arith.mulf %26, %29 : vector<3x8x32xf32>
    %cst_12 = arith.constant dense<0.000000e+00> : vector<3xf32>
    %31 = vector.multi_reduction <add>, %27, %cst_12 [1] : vector<3x8xf32> to vector<3xf32>
    %32 = vector.shape_cast %31 : vector<3xf32> to vector<3x1xf32>
    %cst_13 = arith.constant 1.000000e+00 : f32
    %33 = vector.broadcast %cst_13 : f32 to vector<3x1xf32>
    %34 = arith.maximumf %32, %33 : vector<3x1xf32>
    %cst_14 = arith.constant dense<0.000000e+00> : vector<3x32xf32>
    %35 = vector.multi_reduction <add>, %30, %cst_14 [1] : vector<3x8x32xf32> to vector<3x32xf32>
    %36 = vector.broadcast %34 : vector<3x1xf32> to vector<3x32xf32>
    %37 = arith.divf %35, %36 : vector<3x32xf32>
    %c0_15 = arith.constant 0 : index
    %c0_16 = arith.constant 0 : index
    %38 = vector.load %arg5[%c0_15, %c0_16] : memref<32x128xf32, #tpu.memory_space<vmem>>, vector<32x128xf32>
    %cst_17 = arith.constant dense<0.000000e+00> : vector<3x128xf32>
    %39 = tpu.matmul %37, %38, %cst_17 {dimension_numbers = #tpu.dot_dimension_numbers<[1], [0], [0], [1], [0, 0, 1, 1], [], []>} : vector<3x32xf32>, vector<32x128xf32>, vector<3x128xf32> -> vector<3x128xf32>
    %c0_18 = arith.constant 0 : index
    %c0_19 = arith.constant 0 : index
    %40 = vector.load %arg6[%c0_18, %c0_19] : memref<3x128xf32, #tpu.memory_space<vmem>>, vector<3x128xf32>
    tpu.vector_store %arg6[%c0_18, %c0_19], %39 {strides = array<i32>} : memref<3x128xf32, #tpu.memory_space<vmem>>, vector<3x128xf32>,
    %c0_20 = arith.constant 0 : index
    %c0_21 = arith.constant 0 : index
    %41 = vector.load %arg4[%c0_20, %c0_21] : memref<1x32xf32, #tpu.memory_space<vmem>>, vector<1x32xf32>
    %cst_22 = arith.constant dense<0.000000e+00> : vector<1x128xf32>
    %42 = tpu.matmul %41, %38, %cst_22 {dimension_numbers = #tpu.dot_dimension_numbers<[1], [0], [0], [1], [0, 0, 1, 1], [], []>} : vector<1x32xf32>, vector<32x128xf32>, vector<1x128xf32> -> vector<1x128xf32>
    %c0_23 = arith.constant 0 : index
    %c0_24 = arith.constant 0 : index
    %43 = vector.load %arg7[%c0_23, %c0_24] : memref<1x128xf32, #tpu.memory_space<vmem>>, vector<1x128xf32>
    tpu.vector_store %arg7[%c0_23, %c0_24], %42 {strides = array<i32>} : memref<1x128xf32, #tpu.memory_space<vmem>>, vector<1x128xf32>,
    return
  }
}

</mosaic_0001>

<bundles_post_ra>
// kernel: tpu_custom_call.1
= control target key start
LH: loop header
LB: loop body
LE: loop exit
PB: predicated region body
PF: predicated region fallthrough
CT: control target
= control target key end

     0   :  { %13 = vsyncpa [#allocation3], 0  ;;  %s684_s0 = inlined_call_operand.hbm [shape: f32[3,8,32], index: 0, kind: input, shape index: {}]   ;;  %s685_s1 = inlined_call_operand.hbm [shape: f32[3,8], index: 1, kind: input, shape index: {}]   ;;  %s686_s2 = inlined_call_operand.vmem [shape: f32[1,32], index: 2, kind: input, shape index: {}]   ;;  %s687_s3 = inlined_call_operand.vmem [shape: f32[1,32], index: 3, kind: input, shape index: {}]   ;;  %s688_s4 = inlined_call_operand.vmem [shape: f32[1,32], index: 4, kind: input, shape index: {}]   ;;  %s689_s5 = inlined_call_operand.hbm [shape: f32[32,128], index: 5, kind: input, shape index: {}]   ;;  %s690_s6 = inlined_call_operand.hbm [shape: f32[3,128], index: 6, kind: output, shape index: {0}]   ;;  %s691_s7 = inlined_call_operand.hbm [shape: f32[1,128], index: 7, kind: output, shape index: {1}]  }
   0x1   :  { %14 = vsyncpa [#allocation6], 0 }
   0x2   :  { %15 = vsyncpa [#allocation4], 0  ;;  %s35_s26 = sshll.u32 %s685_s1, 4  ;;  %s36_s26 = int_to_ptr.hbm [resolvable:$true] %s35_s26 }
   0x3   :  { %16 = vsyncpa [#allocation10], 0  ;;  %s517_s27 = smov [#allocation5]   ;;  %s21_s8 = sshll.u32 %s684_s0, 4  ;;  %s22_s8 = int_to_ptr.hbm [resolvable:$true] %s21_s8 }
   0x4   :  { %s37_s28 = sshll.u32 %s517_s27, 4  ;;  %s518_s9 = smov [#allocation2]   ;;  %s38_s28 = int_to_ptr.vmem [resolvable:$true] %s37_s28 }
   0x5   :  { %40 = dma.hbm_to_vmem [thread:$0]  %s36_s26, 64, %s38_s28, [#allocation6]  }
   0x6   :  { %s23_s10 = sshll.u32 %s518_s9, 4  ;;  %s519_s11 = smov 128   ;;  %s24_s10 = int_to_ptr.vmem [resolvable:$true] %s23_s10 }
   0x7   :  { %s520_s12 = smov 8   ;;  %s51_s1 = sshll.u32 %s689_s5, 4  ;;  %s52_s1 = int_to_ptr.hbm [resolvable:$true] %s51_s1 }
   0x8   :  { %29 = dma.hbm_to_vmem [thread:$0]  %s22_s8, 384, %s24_s10, [#allocation3], %s519_s11, %s519_s11, %s520_s12  }
   0x9   :  { %s521_s15 = smov [#allocation7]  }
   0xa   :  { %s53_s16 = sshll.u32 %s521_s15, 4  ;;  %s54_s16 = int_to_ptr.vmem [resolvable:$true] %s53_s16 }
   0xb   :  { %59 = dma.hbm_to_vmem [thread:$0]  %s52_s1, 512, %s54_s16, [#allocation6], %s519_s11, %s519_s11, %s520_s12  }
   0xc   :  { %509 = dma.done.wait [#allocation3], 384  }
   0xd   :  { %510 = vsyncadd [#allocation3], 4294966912 }
   0xe   :  { %511 = dma.done.wait [#allocation6], 576  }
   0xf   :  { %512 = vsyncadd [#allocation6], 4294966720  ;;  %vm77_vm0 = vcmask 261120   ;;  %v73_v0 = vld [vmem:[#allocation2 + $0x8] sm:$0xff]  ;;  %v72_v1 = vld [vmem:[#allocation2] sm:$0xff]  ;;  %v522_v6 = vmov 32.0   ;;  %v165_v13 = vlaneseq }
  0x10   :  { %v81_v2 = vsel %vm77_vm0, %v73_v0, 0.0  ;;  %v78_v3 = vsel %vm77_vm0, %v72_v1, 0.0  ;;  %v74_v4 = vld [vmem:[#allocation2 + $0x10] sm:$0xff]  ;;  %375 = vrcp.f32 %v522_v6  ;;  %v163_v9 = vld [vmem:[#allocation5] sm:$0x7]  ;;  %vm188_vm1 = vcmask 59392  }
  0x11   :  { %82 = vadd.xlane.f32.xlu0 %v81_v2  ;;  %79 = vadd.xlane.f32.xlu1 %v78_v3  ;;  %v84_v5 = vsel %vm77_vm0, %v74_v4, 0.0  ;;  %v189_v10 = vsel %vm188_vm1, %v163_v9, 0.0  ;;  %v166_v15 = vshrl.u32 %v165_v13, 7  ;;  %v164_v19 = vperm.slane %v163_v9, 0  ;;  %v593_v54 = vld [vmem:[%s686_s2] ss:$0 sm:$0xff] }
  0x12   :  { %v171_v33 = vperm.slane %v163_v9, 1  ;;  %v178_v34 = vperm.slane %v163_v9, 2  ;;  %v601_v59 = vld [vmem:[%s687_s3] ss:$0 sm:$0xff]  ;;  %v268_v61 = vld [vmem:[#allocation7 + $0x18] sm:$0xff]  ;;  %v267_v2 = vld [vmem:[#allocation7 + $0x10] sm:$0xff] }
  0x13   :  { %370 = vset.pattern.permute.xlu1 %v166_v15  ;;  %372 = vset.pattern.permute.xlu0 %v166_v15  ;;  %v266_v3 = vld [vmem:[#allocation7 + $0x8] sm:$0xff]  ;;  %s344_s22 = sshll.u32 %s691_s7, 4  ;;  %s524_s23 = smov [#allocation8]   ;;  %s345_s22 = int_to_ptr.hbm [resolvable:$true] %s344_s22 }
  0x14   :  { %371 = vset.pattern.permute.xlu2 %v166_v15  ;;  %292 = vmatpush.msra.mxu0 %v268_v61  ;;  %s331_s24 = sshll.u32 %s524_s23, 4  ;;  %s333_s27 = sshll.u32 %s690_s6, 4  ;;  %s332_s24 = int_to_ptr.vmem [resolvable:$true] %s331_s24  ;;  %s334_s27 = int_to_ptr.hbm [resolvable:$true] %s333_s27 }
  0x15   :  { %317 = vmatpush.msra.mxu1 %v268_v61 }
  0x16   :  { %v376_v7 = vpop.eup %375  ;;  %293 = vmatpush.msra.mxu0 %v267_v2 }
  0x17   :  { %v88_v8 = vmul.f32 32.0, %v376_v7  ;;  %vm92_vm2 = vweird.f32 %v376_v7  ;;  %318 = vmatpush.msra.mxu1 %v267_v2 }
  0x18   :  { %294 = vmatpush.msra.mxu0 %v266_v3 }
  0x19   :  { %85 = vadd.xlane.f32.xlu0 %v84_v5  ;;  %v89_v11 = vsub.f32 1.0, %v88_v8  ;;  %v265_v8 = vld [vmem:[#allocation7] sm:$0xff]  ;;  %319 = vmatpush.msra.mxu1 %v266_v3 }
  0x1a   :  { %295 = vmatpush.msra.mxu0 %v265_v8 }
  0x1b   :  { %v90_v12 = vmul.f32 %v376_v7, %v89_v11  ;;  %320 = vmatpush.msra.mxu1 %v265_v8 }
  0x1d   :  { %v91_v14 = vadd.f32 %v376_v7, %v90_v12 }
  0x1f   :  { %v93_v16 = vsel %vm92_vm2, %v376_v7, %v91_v14  ;;  %v301_v14 = vld [vmem:[%s688_s4] sm:$0x1]  ;;  %s523_s4 = smov [#allocation9]  }
  0x20   :  { %361 = vmatmul.msk.f32.vlgmr.msra.gmra.mxu1 %vm77_vm0, %v301_v14  ;;  %s342_s19 = sshll.u32 %s523_s4, 4  ;;  %s343_s19 = int_to_ptr.vmem [resolvable:$true] %s342_s19 }
  0x21   :  { %190 = vadd.xlane.f32.xlu0 %v189_v10 }
  0x35   :  { %169 = vperm.xlu0 %372, %v164_v19  }
  0x84   :  { %v83_v17 = vpop.xlane.xlu0 %82  ;;  %v80_v22 = vpop.xlane.xlu1 %79 }
  0x85   :  { %v95_v18 = vmul.f32 %v93_v16, %v83_v17  ;;  %v94_v26 = vmul.f32 %v93_v16, %v80_v22 }
  0x87   :  { %v98_v20 = vsub.f32 %v73_v0, %v95_v18  ;;  %v582_v29 = vsub.f32 %v72_v1, %v94_v26 }
  0x89   :  { %v101_v21 = vmul.f32 %v98_v20, %v98_v20  ;;  %v100_v31 = vmul.f32 %v582_v29, %v582_v29 }
  0x8b   :  { %v106_v23 = vsel %vm77_vm0, %v101_v21, 0.0  ;;  %v103_v32 = vsel %vm77_vm0, %v100_v31, 0.0 }
  0x8c   :  { %v86_v24 = vpop.xlane.xlu0 %85  ;;  %107 = vadd.xlane.f32.xlu1 %v106_v23 }
  0x8d   :  { %v96_v25 = vmul.f32 %v93_v16, %v86_v24 }
  0x8f   :  { %v578_v27 = vsub.f32 %v74_v4, %v96_v25 }
  0x91   :  { %v102_v28 = vmul.f32 %v578_v27, %v578_v27 }
  0x93   :  { %v109_v30 = vsel %vm77_vm0, %v102_v28, 0.0 }
  0x94   :  { %110 = vadd.xlane.f32.xlu2 %v109_v30  ;;  %v191_v44 = vpop.xlane.xlu0 %190 }
  0x95   :  { %v588_v49 = vmax.f32 %v191_v44, 1.0 }
  0x97   :  { %v596_v56 = vrot.slane %v588_v49, 1  ;;  %v604_v62 = vrot.slane %v588_v49, 2  ;;  %vm225_vm14 = vweird.f32 %v588_v49 }
  0x99   :  { %vm240_vm12 = vweird.f32 %v596_v56  ;;  %vm255_vm15 = vweird.f32 %v604_v62  ;;  %v259_v61 = vand.u32 2147483647, %v604_v62 }
  0x9c   :  { %104 = vadd.xlane.f32.xlu2 %v103_v32 }
  0xa5   :  { %176 = vperm.xlu1 %370, %v171_v33  }
  0xb4   :  { %183 = vperm.xlu2 %371, %v178_v34  }
  0xff   :  { %v108_v35 = vpop.xlane.xlu1 %107 }
 0x100   :  { %v113_v36 = vmul.f32 %v108_v35, %v93_v16 }
 0x102   :  { %v116_v37 = vadd.f32 1e-05, %v113_v36 }
 0x104   :  { %377 = vrsqrt.f32 %v116_v37  ;;  %vm134_vm4 = vweird.f32 %v116_v37 }
 0x107   :  { %v111_v38 = vpop.xlane.xlu2 %110 }
 0x108   :  { %v114_v39 = vmul.f32 %v111_v38, %v93_v16 }
 0x10a   :  { %v378_v40 = vpop.eup %377  ;;  %v117_v41 = vadd.f32 1e-05, %v114_v39 }
 0x10b   :  { %v129_v42 = vmul.f32 %v378_v40, %v116_v37  ;;  %vm135_vm3 = vweird.f32 %v378_v40 }
 0x10c   :  { %379 = vrsqrt.f32 %v117_v41  ;;  %vm136_vm5 = vmor %vm134_vm4, %vm135_vm3  ;;  %vm144_vm7 = vweird.f32 %v117_v41 }
 0x10d   :  { %v130_v43 = vmul.f32 %v378_v40, %v129_v42 }
 0x10f   :  { %v131_v45 = vmul.f32 0.5, %v130_v43  ;;  %v105_v46 = vpop.xlane.xlu2 %104 }
 0x110   :  { %v112_v47 = vmul.f32 %v105_v46, %v93_v16 }
 0x111   :  { %v132_v48 = vsub.f32 1.5, %v131_v45 }
 0x112   :  { %v380_v50 = vpop.eup %379  ;;  %v115_v51 = vadd.f32 1e-05, %v112_v47 }
 0x113   :  { %v133_v52 = vmul.f32 %v378_v40, %v132_v48  ;;  %v139_v53 = vmul.f32 %v380_v50, %v117_v41  ;;  %vm145_vm6 = vweird.f32 %v380_v50 }
 0x114   :  { %381 = vrsqrt.f32 %v115_v51  ;;  %vm146_vm8 = vmor %vm144_vm7, %vm145_vm6  ;;  %vm124_vm10 = vweird.f32 %v115_v51  ;;  %vm260_vm7 = vcmp.eq.f32.partialorder %v259_v61, 8.507059e+37 }
 0x115   :  { %v140_v55 = vmul.f32 %v380_v50, %v139_v53  ;;  %v137_v57 = vsel %vm136_vm5, %v378_v40, %v133_v52  ;;  %383 = vrcp.f32 %v596_v56  ;;  %v170_v40 = vpop.permute.xlu0 %169 }
 0x116   :  { %v149_v58 = vmul.f32 %v137_v57, %v98_v20  ;;  %385 = vrcp.f32 %v604_v62  ;;  %v244_v57 = vand.u32 2147483647, %v596_v56 }
 0x117   :  { %v141_v60 = vmul.f32 0.5, %v140_v55  ;;  %v177_v1 = vpop.permute.xlu1 %176  ;;  %387 = vrcp.f32 %v588_v49  ;;  %v184_v21 = vpop.permute.xlu2 %183 }
 0x118   :  { %v155_v63 = vmul.f32 %v593_v54, %v149_v58  ;;  %v261_v58 = vand.u32 2147483648, %v604_v62  ;;  %vm245_vm6 = vcmp.eq.f32.partialorder %v244_v57, 8.507059e+37 }
 0x119   :  { %v142_v0 = vsub.f32 1.5, %v141_v60 }
 0x11a   :  { %v382_v4 = vpop.eup %381  ;;  %v161_v5 = vadd.f32 %v601_v59, %v155_v63 }
 0x11b   :  { %v143_v6 = vmul.f32 %v380_v50, %v142_v0  ;;  %v119_v7 = vmul.f32 %v382_v4, %v115_v51  ;;  %v616_v15 = vpop.eup %383  ;;  %vm125_vm9 = vweird.f32 %v382_v4  ;;  %v231_v0 = vand.u32 2147483648, %v588_v49 }
 0x11c   :  { %v186_v9 = vmul.f32 %v177_v1, %v161_v5  ;;  %v620_v19 = vpop.eup %385  ;;  %v236_v24 = vmul.f32 %v616_v15, %v596_v56  ;;  %vm126_vm11 = vmor %vm124_vm10, %vm125_vm9  ;;  %vm241_vm13 = vweird.f32 %v616_v15  ;;  %vm273_vm9 = vcmask 1041409  }
 0x11d   :  { %v120_v10 = vmul.f32 %v382_v4, %v119_v7  ;;  %v147_v11 = vsel %vm146_vm8, %v380_v50, %v143_v6  ;;  %v622_v22 = vpop.eup %387  ;;  %v251_v28 = vmul.f32 %v620_v19, %v604_v62  ;;  %v246_v50 = vand.u32 2147483648, %v596_v56  ;;  %vm646_vm2 = vmor %vm240_vm12, %vm241_vm13 }
 0x11e   :  { %v200_v12 = vsel %vm77_vm0, %v186_v9, 0.0  ;;  %v150_v13 = vmul.f32 %v147_v11, %v578_v27  ;;  %v221_v31 = vmul.f32 %v622_v22, %v588_v49  ;;  %v237_v34 = vsub.f32 1.0, %v236_v24 }
 0x11f   :  { %v121_v16 = vmul.f32 0.5, %v120_v10  ;;  %v201_v17 = vrot.slane %v200_v12, 4  ;;  %v252_v38 = vsub.f32 1.0, %v251_v28  ;;  %vm256_vm1 = vweird.f32 %v620_v19 }
 0x120   :  { %v156_v18 = vmul.f32 %v593_v54, %v150_v13  ;;  %v222_v41 = vsub.f32 1.0, %v221_v31  ;;  %v238_v43 = vmul.f32 %v616_v15, %v237_v34  ;;  %vm226_vm3 = vweird.f32 %v622_v22  ;;  %vm656_vm4 = vmor %vm255_vm15, %vm256_vm1 }
 0x121   :  { %v122_v20 = vsub.f32 1.5, %v121_v16  ;;  %v202_v26 = vadd.f32 %v201_v17, %v200_v12  ;;  %v229_v56 = vand.u32 2147483647, %v588_v49  ;;  %vm667_vm5 = vmor %vm225_vm14, %vm226_vm3  ;;  %v262_v7 = vor.u32 1.1754944e-38, %v261_v58 }
 0x122   :  { %v162_v23 = vadd.f32 %v601_v59, %v156_v18  ;;  %v223_v48 = vmul.f32 %v622_v22, %v222_v41  ;;  %v239_v52 = vadd.f32 %v616_v15, %v238_v43  ;;  %v232_v12 = vor.u32 1.1754944e-38, %v231_v0 }
 0x123   :  { %v123_v25 = vmul.f32 %v382_v4, %v122_v20  ;;  %v203_v35 = vrot.slane %v202_v26, 2  ;;  %vm230_vm8 = vcmp.eq.f32.partialorder %v229_v56, 8.507059e+37  ;;  %vm276_vm10 = vcmask 1042434  }
 0x124   :  { %v187_v27 = vmul.f32 %v184_v21, %v162_v23  ;;  %v224_v2 = vadd.f32 %v622_v22, %v223_v48  ;;  %v243_v3 = vsel %vm646_vm2, %v616_v15, %v239_v52 }
 0x125   :  { %v127_v30 = vsel %vm126_vm11, %v382_v4, %v123_v25  ;;  %v204_v44 = vadd.f32 %v203_v35, %v202_v26  ;;  %v247_v4 = vor.u32 1.1754944e-38, %v246_v50 }
 0x126   :  { %v207_v32 = vsel %vm77_vm0, %v187_v27, 0.0  ;;  %v148_v33 = vmul.f32 %v127_v30, %v582_v29  ;;  %v253_v29 = vmul.f32 %v620_v19, %v252_v38  ;;  %v228_v11 = vsel %vm667_vm5, %v622_v22, %v224_v2  ;;  %v322_v22 = vpop.f32.mrf.mxu1 }
 0x127   :  { %v208_v36 = vrot.slane %v207_v32, 4  ;;  %v205_v53 = vrot.slane %v204_v44, 1  ;;  %v248_v13 = vsel %vm245_vm6, %v247_v4, %v243_v3  ;;  %v233_v18 = vsel %vm230_vm8, %v232_v12, %v228_v11  ;;  %325 = vst [vmem:[#allocation9] sm:$0x1] %v322_v22 }
 0x128   :  { %v154_v37 = vmul.f32 %v593_v54, %v148_v33  ;;  %v254_v60 = vadd.f32 %v620_v19, %v253_v29  ;;  %347 = dma.vmem_to_hbm [thread:$0]  %s343_s19, 16, %s345_s22, [#allocation10]  }
 0x129   :  { %v209_v39 = vadd.f32 %v208_v36, %v207_v32  ;;  %v206_v5 = vadd.f32 %v205_v53, %v204_v44 }
 0x12a   :  { %v160_v42 = vadd.f32 %v601_v59, %v154_v37  ;;  %v258_v9 = vsel %vm656_vm4, %v620_v19, %v254_v60 }
 0x12b   :  { %v210_v45 = vrot.slane %v209_v39, 2  ;;  %v249_v14 = vmul.f32 %v248_v13, %v206_v5  ;;  %v263_v15 = vsel %vm260_vm7, %v262_v7, %v258_v9 }
 0x12c   :  { %v185_v46 = vmul.f32 %v170_v40, %v160_v42 }
 0x12d   :  { %v211_v47 = vadd.f32 %v210_v45, %v209_v39  ;;  %v272_v21 = vrot.slane %v249_v14, 7 }
 0x12e   :  { %v193_v51 = vsel %vm77_vm0, %v185_v46, 0.0 }
 0x12f   :  { %v194_v54 = vrot.slane %v193_v51, 4  ;;  %v212_v59 = vrot.slane %v211_v47, 1 }
 0x131   :  { %v195_v63 = vadd.f32 %v194_v54, %v193_v51  ;;  %v213_v8 = vadd.f32 %v212_v59, %v211_v47 }
 0x133   :  { %v196_v6 = vrot.slane %v195_v63, 2  ;;  %v264_v16 = vmul.f32 %v263_v15, %v213_v8 }
 0x135   :  { %v197_v10 = vadd.f32 %v196_v6, %v195_v63  ;;  %v275_v19 = vrot.slane %v264_v16, 6 }
 0x137   :  { %v198_v49 = vrot.slane %v197_v10, 1 }
 0x139   :  { %v199_v17 = vadd.f32 %v198_v49, %v197_v10 }
 0x13b   :  { %v234_v20 = vmul.f32 %v233_v18, %v199_v17 }
 0x13d   :  { %v274_v23 = vsel %vm273_vm9, %v272_v21, %v234_v20 }
 0x13e   :  { %v277_v24 = vsel %vm276_vm10, %v275_v19, %v274_v23 }
 0x13f   :  { %360 = vmatmul.msk.f32.vlgmr.msra.gmra.mxu0 %vm77_vm0, %v277_v24 }
 0x1bc   :  { %v297_v25 = vpop.f32.mrf.mxu0 }
 0x1bd   :  { %300 = vst [vmem:[#allocation8] sm:$0x7] %v297_v25 }
 0x1be   :  { %336 = dma.vmem_to_hbm [thread:$0]  %s332_s24, 64, %s334_s27, [#allocation4]  }
 0x1bf   :  { %513 = dma.done.wait [#allocation4], 64  }
 0x1c0   :  { %514 = vsyncadd [#allocation4], 4294967232 }
 0x1c1   :  { %515 = dma.done.wait [#allocation10], 16  }
 0x1c2   :  { %516 = vsyncadd [#allocation10], 4294967280 }
 0x1c3   :  { %356 = vsyncpa [#allocation3], 1 }
 0x1c4   :  { %357 = vsyncpa [#allocation6], 1 }
 0x1c5   :  { %358 = vsyncpa [#allocation4], 1 }
 0x1c6   :  { %359 = vsyncpa [#allocation10], 1 }

</bundles_post_ra>
